<compile_context>
chip_gen: v7x
topology: tpu7x:2x2x1
jax: 0.10.0
libtpu: 0.0.40
codegen_flags: <defaults>
</compile_context>

<pallas_src>
import functools
import math

import jax
import jax.numpy as jnp
from jax.experimental import pallas as pl
from jax.experimental.pallas import tpu as pltpu


def _round_up(x, m):
    return ((x + m - 1) // m) * m


def _layernorm_kernel(x_ref, w_ref, b_ref, o_ref, *, eps, hidden):
    # x_ref: (row_tile, Hp), w_ref/b_ref: (1, Hp). Padded lanes/rows are zero,
    # so sums are unaffected; we divide by the *real* hidden size.
    x = x_ref[...].astype(jnp.float32)
    inv_h = jnp.float32(1.0 / hidden)

    # Single pass over x: both reductions read the same tile (XLU), variance
    # via E[x^2] - E[x]^2 (fine at f32 for LayerNorm-scale inputs).
    sum_x = jnp.sum(x, axis=-1, keepdims=True)
    sum_x2 = jnp.sum(x * x, axis=-1, keepdims=True)
    mean = sum_x * inv_h
    var = jnp.maximum(sum_x2 * inv_h - mean * mean, 0.0)

    # rsqrt goes to the EUP (its own VLIW slot); multiply is a cheap VPU op.
    inv_std = jax.lax.rsqrt(var + jnp.float32(eps))
    y = (x - mean) * inv_std

    w = w_ref[...].astype(jnp.float32)
    b = b_ref[...].astype(jnp.float32)
    o_ref[...] = (y * w + b).astype(o_ref.dtype)


def fusion_layer_norm(x, weight, bias, eps=1e-12, target_block_bytes=2 << 20):
    """Equivalent of Fusion.forward (BertLayerNorm over the last axis)."""
    orig_shape = x.shape
    hidden = orig_shape[-1]
    rows = math.prod(orig_shape[:-1]) if len(orig_shape) > 1 else 1

    itemsize = jnp.dtype(x.dtype).itemsize
    x2 = x.reshape(rows, hidden)
    w2 = weight.reshape(1, hidden)
    b2 = bias.reshape(1, hidden)

    # --- pad hidden to a lane-dense multiple of 128 (avoids masked vst) ---
    hp = max(128, _round_up(hidden, 128))
    if hp != hidden:
        x2 = jnp.pad(x2, ((0, 0), (0, hp - hidden)))
        w2 = jnp.pad(w2, ((0, 0), (0, hp - hidden)))
        b2 = jnp.pad(b2, ((0, 0), (0, hp - hidden)))

    # --- pick row_tile: ~target_block_bytes per DMA'd block, multiple of 8 ---
    row_tile = max(8, (target_block_bytes // (hp * itemsize)) // 8 * 8)

    # Cap so double-buffered in/out blocks (HBM dtype) plus ~3 f32 temporaries
    # stay under ~28 MiB of VMEM (safe for v7x's 64 MiB / 32 MiB scoped).
    vmem_budget = 28 * 1024 * 1024
    per_row_bytes = hp * (4 * itemsize + 12)
    row_tile = min(row_tile, max(8, (vmem_budget // per_row_bytes) // 8 * 8))

    # Don't exceed the (row-padded) problem size.
    row_tile = min(row_tile, _round_up(rows, 8))

    # Keep >= 2 grid steps when there is enough work (v7x megacore sharding).
    if rows > 16:
        row_tile = min(row_tile, _round_up(pl.cdiv(rows, 2), 8))

    # --- pad rows to a multiple of row_tile (padded rows are discarded) ---
    rows_p = _round_up(rows, row_tile)
    if rows_p != rows:
        x2 = jnp.pad(x2, ((0, rows_p - rows), (0, 0)))

    grid = (rows_p // row_tile,)

    out = pl.pallas_call(
        functools.partial(_layernorm_kernel, eps=float(eps), hidden=hidden),
        out_shape=jax.ShapeDtypeStruct((rows_p, hp), x.dtype),
        grid_spec=pltpu.PrefetchScalarGridSpec(
            num_scalar_prefetch=0,
            grid=grid,
            in_specs=[
                pl.BlockSpec((row_tile, hp), lambda i: (i, 0)),
                pl.BlockSpec((1, hp), lambda i: (0, 0)),
                pl.BlockSpec((1, hp), lambda i: (0, 0)),
            ],
            out_specs=pl.BlockSpec((row_tile, hp), lambda i: (i, 0)),
        ),
        compiler_params=pltpu.CompilerParams(
            dimension_semantics=("parallel",),
            vmem_limit_bytes=48 * 1024 * 1024,
        ),
    )(x2, w2, b2)

    return out[:rows, :hidden].reshape(orig_shape)


def _reference(x, weight, bias, eps=1e-12):
    u = jnp.mean(x, axis=-1, keepdims=True)
    s = x - u
    var = jnp.mean(s * s, axis=-1, keepdims=True)
    return weight * (s / jnp.sqrt(var + eps)) + bias


if __name__ == "__main__":
    # Shapes consistent with a BERT-style layer norm: (batch, seq, hidden).
    batch, seq, hidden = 2, 8, 32
    key = jax.random.PRNGKey(0)
    x = jax.random.normal(key, (batch, seq, hidden), dtype=jnp.float32)

    # Deterministic parameter init matching BertLayerNorm.__init__:
    weight = jnp.ones((hidden,), dtype=jnp.float32)
    bias = jnp.zeros((hidden,), dtype=jnp.float32)

    out = fusion_layer_norm(x, weight, bias, eps=1e-12)
    out = jax.block_until_ready(out)
    ref = _reference(x, weight, bias, eps=1e-12)
    assert jnp.allclose(out, ref, atol=1e-5, rtol=1e-5), "mismatch vs reference"

    # Second small case exercising ragged rows + hidden padding + affine params.
    k1, k2, k3 = jax.random.split(jax.random.PRNGKey(0), 3)
    x2 = jax.random.normal(k1, (3, 5, 96), dtype=jnp.float32)
    w2 = jax.random.normal(k2, (96,), dtype=jnp.float32)
    b2 = jax.random.normal(k3, (96,), dtype=jnp.float32)
    out2 = jax.block_until_ready(fusion_layer_norm(x2, w2, b2, eps=1e-12))
    ref2 = _reference(x2, w2, b2, eps=1e-12)
    assert jnp.allclose(out2, ref2, atol=1e-5, rtol=1e-5), "mismatch (case 2)"

    print("KERNEL_OK")
</pallas_src>

<mosaic_0001>
module attributes {stable_mosaic.version = 11 : i64} {
  func.func @_layernorm_kernel(%arg0: i32, %arg1: memref<16x128xf32, #tpu.memory_space<vmem>>, %arg2: memref<1x128xf32, #tpu.memory_space<vmem>>, %arg3: memref<1x128xf32, #tpu.memory_space<vmem>>, %arg4: memref<16x128xf32, #tpu.memory_space<vmem>>) attributes {dimension_semantics = [#tpu.dimension_semantics<parallel>], iteration_bounds = array<i64: 1>, scalar_prefetch = 0 : i64, scratch_operands = 0 : i64, tpu.core_type = #tpu.core_type<tc>, window_params = [{transform_indices = @transform_0, window_bounds = array<i64: 16, 128>}, {pipeline_mode = #tpu.pipeline_mode<synchronous>, transform_indices = @transform_1, window_bounds = array<i64: 1, 128>}, {pipeline_mode = #tpu.pipeline_mode<synchronous>, transform_indices = @transform_2, window_bounds = array<i64: 1, 128>}, {transform_indices = @transform_3, window_bounds = array<i64: 16, 128>}]} {
    %c0 = arith.constant 0 : index
    %c0_0 = arith.constant 0 : index
    %0 = vector.load %arg1[%c0, %c0_0] : memref<16x128xf32, #tpu.memory_space<vmem>>, vector<16x128xf32>
    %cst = arith.constant dense<0.000000e+00> : vector<16xf32>
    %1 = vector.multi_reduction <add>, %0, %cst [1] : vector<16x128xf32> to vector<16xf32>
    %2 = vector.shape_cast %1 : vector<16xf32> to vector<16x1xf32>
    %3 = arith.mulf %0, %0 : vector<16x128xf32>
    %cst_1 = arith.constant dense<0.000000e+00> : vector<16xf32>
    %4 = vector.multi_reduction <add>, %3, %cst_1 [1] : vector<16x128xf32> to vector<16xf32>
    %5 = vector.shape_cast %4 : vector<16xf32> to vector<16x1xf32>
    %cst_2 = arith.constant 3.125000e-02 : f32
    %6 = vector.broadcast %cst_2 : f32 to vector<16x1xf32>
    %7 = arith.mulf %2, %6 : vector<16x1xf32>
    %cst_3 = arith.constant 3.125000e-02 : f32
    %8 = vector.broadcast %cst_3 : f32 to vector<16x1xf32>
    %9 = arith.mulf %5, %8 : vector<16x1xf32>
    %10 = arith.mulf %7, %7 : vector<16x1xf32>
    %11 = arith.subf %9, %10 : vector<16x1xf32>
    %cst_4 = arith.constant 0.000000e+00 : f32
    %12 = vector.broadcast %cst_4 : f32 to vector<16x1xf32>
    %13 = arith.maximumf %11, %12 : vector<16x1xf32>
    %cst_5 = arith.constant 9.99999996E-13 : f32
    %14 = vector.broadcast %cst_5 : f32 to vector<16x1xf32>
    %15 = arith.addf %13, %14 : vector<16x1xf32>
    %16 = math.rsqrt %15 : vector<16x1xf32>
    %17 = vector.broadcast %7 : vector<16x1xf32> to vector<16x128xf32>
    %18 = arith.subf %0, %17 : vector<16x128xf32>
    %19 = vector.broadcast %16 : vector<16x1xf32> to vector<16x128xf32>
    %20 = arith.mulf %18, %19 : vector<16x128xf32>
    %c0_6 = arith.constant 0 : index
    %c0_7 = arith.constant 0 : index
    %21 = vector.load %arg2[%c0_6, %c0_7] : memref<1x128xf32, #tpu.memory_space<vmem>>, vector<1x128xf32>
    %c0_8 = arith.constant 0 : index
    %c0_9 = arith.constant 0 : index
    %22 = vector.load %arg3[%c0_8, %c0_9] : memref<1x128xf32, #tpu.memory_space<vmem>>, vector<1x128xf32>
    %23 = vector.broadcast %21 : vector<1x128xf32> to vector<16x128xf32>
    %24 = arith.mulf %20, %23 : vector<16x128xf32>
    %25 = vector.broadcast %22 : vector<1x128xf32> to vector<16x128xf32>
    %26 = arith.addf %24, %25 : vector<16x128xf32>
    %c0_10 = arith.constant 0 : index
    %c0_11 = arith.constant 0 : index
    %27 = vector.load %arg4[%c0_10, %c0_11] : memref<16x128xf32, #tpu.memory_space<vmem>>, vector<16x128xf32>
    tpu.vector_store %arg4[%c0_10, %c0_11], %26 {strides = array<i32>} : memref<16x128xf32, #tpu.memory_space<vmem>>, vector<16x128xf32>,
    return
  }
  func.func @transform_0(%arg0: i32) -> (i32, i32) {
    %c0_i32 = arith.constant 0 : i32
    %c0_i32_0 = arith.constant 0 : i32
    return %arg0, %c0_i32 : i32, i32
  }
  func.func @transform_1(%arg0: i32) -> (i32, i32) {
    %c0_i32 = arith.constant 0 : i32
    %c0_i32_0 = arith.constant 0 : i32
    %c0_i32_1 = arith.constant 0 : i32
    return %c0_i32, %c0_i32_0 : i32, i32
  }
  func.func @transform_2(%arg0: i32) -> (i32, i32) {
    %c0_i32 = arith.constant 0 : i32
    %c0_i32_0 = arith.constant 0 : i32
    %c0_i32_1 = arith.constant 0 : i32
    return %c0_i32, %c0_i32_0 : i32, i32
  }
  func.func @transform_3(%arg0: i32) -> (i32, i32) {
    %c0_i32 = arith.constant 0 : i32
    %c0_i32_0 = arith.constant 0 : i32
    return %arg0, %c0_i32 : i32, i32
  }
}

</mosaic_0001>

<bundles_post_ra>
// kernel: tpu_custom_call.1
= control target key start
LH: loop header
LB: loop body
LE: loop exit
PB: predicated region body
PF: predicated region fallthrough
CT: control target
= control target key end

     0   :  { %8 = vsyncpa [#allocation3], 0  ;;  %s214_s0 = inlined_call_operand.hbm [shape: f32[16,128], index: 0, kind: input, shape index: {}]   ;;  %s215_s1 = inlined_call_operand.vmem [shape: f32[1,128], index: 1, kind: input, shape index: {}]   ;;  %s216_s2 = inlined_call_operand.vmem [shape: f32[1,128], index: 2, kind: input, shape index: {}]   ;;  %s217_s3 = inlined_call_operand.hbm [shape: f32[16,128], index: 3, kind: output, shape index: {}]  }
   0x1   :  { %9 = vsyncpa [#allocation4], 0  ;;  %s154_s12 = smov [#allocation2]   ;;  %s106_s16 = scalar_lea.hbm %s214_s0, 256 }
   0x2   :  { %s15_s13 = sshll.u32 %s154_s12, 4  ;;  %p107_p0 = scmp.ne.s32.totalorder %s214_s0, %s106_s16  ;;  %s16_s13 = int_to_ptr.vmem [resolvable:$true] %s15_s13 }
   0x3   :  { %p110_p1 = scmp.lt.u32.totalorder %s106_s16, %s214_s0 }
   0x5   :  { %p112_p2 = pnand %p110_p1, %p107_p0 }
   0x7   :  { %115 = shalt.err (!%p112_p2)
}
   0x8   :  { %s116_s21 = scalar_lea.vmem %s16_s13, 256  ;;  %p121_p4 = scmp.lt.s32.totalorder %s16_s13, %s16_s13 }
   0x9   :  { %p117_p3 = scmp.ne.s32.totalorder %s16_s13, %s116_s21  ;;  %p122_p5 = scmp.lt.s32.totalorder %s116_s21, %s116_s21 }
   0xb   :  { %p123_p6 = por %p122_p5, %p121_p4 }
   0xd   :  { %p124_p7 = pnand %p123_p6, %p117_p3 }
   0xf   :  { %127 = shalt.err (!%p124_p7)
}
  0x10   :  { %s155_s22 = smov 128   ;;  %s156_s23 = smov 8  }
  0x11   :  { %21 = dma.hbm_to_vmem [thread:$0]  %s214_s0, 256, %s16_s13, [#allocation3], %s155_s22, %s155_s22, %s156_s23  }
  0x12   :  { %150 = dma.done.wait [#allocation3], 256  }
  0x13   :  { %151 = vsyncadd [#allocation3], 4294967040  ;;  %v29_v0 = vld [vmem:[#allocation2] sm:$0xff]  ;;  %v30_v1 = vld [vmem:[#allocation2 + $0x8] sm:$0xff]  ;;  %s157_s29 = smov [#allocation5]  }
  0x14   :  { %31 = vadd.xlane.f32.xlu0 %v29_v0  ;;  %v35_v2 = vmul.f32 %v29_v0, %v29_v0  ;;  %v36_v3 = vmul.f32 %v30_v1, %v30_v1  ;;  %v96_v22 = vld [vmem:[%s215_s1] ss:$0 sm:$0xff]  ;;  %s84_s30 = sshll.u32 %s157_s29, 4  ;;  %s85_s30 = int_to_ptr.vmem [resolvable:$true] %s84_s30 }
  0x15   :  { %v97_v24 = vld [vmem:[%s216_s2] ss:$0 sm:$0xff]  ;;  %s128_s4 = scalar_lea.vmem %s85_s30, 256  ;;  %p133_p9 = scmp.lt.s32.totalorder %s85_s30, %s85_s30 }
  0x16   :  { %37 = vadd.xlane.f32.xlu1 %v35_v2  ;;  %p129_p8 = scmp.ne.s32.totalorder %s85_s30, %s128_s4  ;;  %p134_p10 = scmp.lt.s32.totalorder %s128_s4, %s128_s4 }
  0x18   :  { %33 = vadd.xlane.f32.xlu0 %v30_v1  ;;  %p135_p11 = por %p134_p10, %p133_p9 }
  0x1a   :  { %39 = vadd.xlane.f32.xlu1 %v36_v3  ;;  %p136_p12 = pnand %p135_p11, %p129_p8 }
  0xa1   :  { %v32_v4 = vpop.xlane.xlu0 %31 }
  0xa2   :  { %v41_v5 = vmul.f32 0.03125, %v32_v4 }
  0xa3   :  { %v38_v6 = vpop.xlane.xlu1 %37 }
  0xa4   :  { %v45_v7 = vmul.f32 %v41_v5, %v41_v5  ;;  %v43_v8 = vmul.f32 0.03125, %v38_v6  ;;  %v55_v20 = vsub.f32 %v29_v0, %v41_v5 }
  0xa5   :  { %v34_v9 = vpop.xlane.xlu0 %33 }
  0xa6   :  { %v47_v10 = vsub.f32 %v43_v8, %v45_v7  ;;  %v42_v11 = vmul.f32 0.03125, %v34_v9 }
  0xa7   :  { %v40_v12 = vpop.xlane.xlu1 %39 }
  0xa8   :  { %v49_v13 = vmax.f32 %v47_v10, 0.0  ;;  %v46_v14 = vmul.f32 %v42_v11, %v42_v11  ;;  %v44_v15 = vmul.f32 0.03125, %v40_v12  ;;  %v56_v25 = vsub.f32 %v30_v1, %v42_v11 }
  0xaa   :  { %v51_v16 = vadd.f32 1e-12, %v49_v13  ;;  %v48_v17 = vsub.f32 %v44_v15, %v46_v14 }
  0xac   :  { %102 = vrsqrt.f32 %v51_v16  ;;  %v50_v18 = vmax.f32 %v48_v17, 0.0 }
  0xae   :  { %v52_v19 = vadd.f32 1e-12, %v50_v18 }
  0xb0   :  { %104 = vrsqrt.f32 %v52_v19 }
  0xb6   :  { %v103_v21 = vpop.eup %102 }
  0xb7   :  { %v57_v23 = vmul.f32 %v103_v21, %v55_v20 }
  0xb9   :  { %v67_v26 = vmul.f32 %v96_v22, %v57_v23 }
  0xba   :  { %v105_v27 = vpop.eup %104 }
  0xbb   :  { %v58_v28 = vmul.f32 %v105_v27, %v56_v25  ;;  %v75_v29 = vadd.f32 %v97_v24, %v67_v26 }
  0xbd   :  { %v68_v30 = vmul.f32 %v96_v22, %v58_v28  ;;  %77 = vst [vmem:[#allocation5] sm:$0xff] %v75_v29 }
  0xbf   :  { %v76_v31 = vadd.f32 %v97_v24, %v68_v30 }
  0xc1   :  { %78 = vst [vmem:[#allocation5 + $0x8] sm:$0xff] %v76_v31 }
  0xc2   :  { %139 = shalt.err (!%p136_p12)
}
  0xc3   :  { %s140_s5 = scalar_lea.hbm %s217_s3, 256 }
  0xc4   :  { %p141_p13 = scmp.ne.s32.totalorder %s217_s3, %s140_s5  ;;  %p144_p0 = scmp.lt.u32.totalorder %s140_s5, %s217_s3 }
  0xc6   :  { %p146_p1 = pnand %p144_p0, %p141_p13 }
  0xc8   :  { %149 = shalt.err (!%p146_p1)
}
  0xc9   :  { %90 = dma.vmem_to_hbm [thread:$0]  %s85_s30, 256, %s217_s3, [#allocation4], %s155_s22, %s155_s22, %s156_s23  }
  0xca   :  { %152 = dma.done.wait [#allocation4], 256  }
  0xcb   :  { %153 = vsyncadd [#allocation4], 4294967040 }
  0xcc   :  { %94 = vsyncpa [#allocation3], 1 }
  0xcd   :  { %95 = vsyncpa [#allocation4], 1 }

</bundles_post_ra>
